<compile_context>
chip_gen: v7x
topology: tpu7x:2x2x1
jax: 0.10.0
libtpu: 0.0.40
codegen_flags: <defaults>
</compile_context>

<pallas_src>
import math
import jax
import jax.numpy as jnp
from jax.experimental import pallas as pl
from jax.experimental.pallas import tpu as pltpu

NUM_CLASSES = 10
D_IN, D_H1, D_H2 = 57, 64, 32
NEG_SLOPE = 0.2


def _leaky_relu(x, slope=NEG_SLOPE):
    return jnp.where(x > 0, x, slope * x)


def _round_up(v, m):
    return ((v + m - 1) // m) * m


def mlp_kernel(x_ref, w1_ref, b1_ref, w2_ref, b2_ref, w3_ref, b3_ref, o_ref):
    # Fused 3-layer MLP (fp32 throughout; MXU accumulates in fp32). The kernel is
    # HBM-bound (~20 KFLOP/row), so fp32 compute costs nothing extra and matches the
    # original PyTorch numerics exactly.
    x = x_ref[...]                                                       # (TB, 57) f32
    h1 = jnp.dot(x, w1_ref[...], preferred_element_type=jnp.float32) + b1_ref[...]
    h1 = _leaky_relu(h1)                                                 # (TB, 64)
    h2 = jnp.dot(h1, w2_ref[...], preferred_element_type=jnp.float32) + b2_ref[...]
    h2 = _leaky_relu(h2)                                                 # (TB, 32)
    out = jnp.dot(h2, w3_ref[...], preferred_element_type=jnp.float32) + b3_ref[...]
    o_ref[...] = out.astype(o_ref.dtype)                                 # (TB, 10) f32


def cnn_mlp_forward(x, params, *, tile_b=4096):
    """Pallas forward for CNN (mlp path). x: (B, 57) float32 -> (B, 10) float32."""
    w1, b1, w2, b2, w3, b3 = params
    B = x.shape[0]

    # Tile size: multiple of 8 (fp32 sublane), clamped to the (rounded-up) batch.
    tile_b = max(8, (int(tile_b) // 8) * 8)
    b_ceil = _round_up(B, 8)
    # v7x has 2 TensorCores: if the whole batch would fit in one grid step but the
    # batch is big enough to be worth splitting, halve the tile so both TCs get work.
    if tile_b >= b_ceil and b_ceil >= 512:
        tile_b = _round_up((b_ceil + 1) // 2, 8)
    tile_b = min(tile_b, b_ceil)

    n_tiles = pl.cdiv(b_ceil, tile_b)
    B_pad = n_tiles * tile_b

    # Pad the batch only when needed (at most one tile of zero rows); padded rows are
    # sliced off after the kernel. No column padding and no dtype-cast passes.
    if B_pad != B:
        x = jnp.pad(x, ((0, B_pad - B), (0, 0)))

    # Weights/biases are tiny; every grid step gets the full tensor (block index 0).
    full = lambda shape: pl.BlockSpec(shape, lambda i: (0,) * len(shape))

    out = pl.pallas_call(
        mlp_kernel,
        out_shape=jax.ShapeDtypeStruct((B_pad, NUM_CLASSES), jnp.float32),
        grid_spec=pltpu.PrefetchScalarGridSpec(
            num_scalar_prefetch=0,
            grid=(n_tiles,),
            in_specs=[
                pl.BlockSpec((tile_b, D_IN), lambda i: (i, 0)),   # x tile (fp32 stream)
                full((D_IN, D_H1)),                               # w1
                full((1, D_H1)),                                  # b1
                full((D_H1, D_H2)),                               # w2
                full((1, D_H2)),                                  # b2
                full((D_H2, NUM_CLASSES)),                        # w3
                full((1, NUM_CLASSES)),                           # b3
            ],
            out_specs=pl.BlockSpec((tile_b, NUM_CLASSES), lambda i: (i, 0)),
        ),
        compiler_params=pltpu.CompilerParams(
            dimension_semantics=("parallel",),     # batch tiles shard across v7x TCs
            vmem_limit_bytes=32 << 20,             # explicit; safe on v5e/v6e/v7x
        ),
    )(x, w1, b1, w2, b2, w3, b3)

    # Drop the (zero) batch padding rows only when we actually padded.
    return out if B_pad == B else out[:B]


def init_params(key):
    """Deterministic init mimicking PyTorch nn.Linear default (uniform +/- 1/sqrt(fan_in)).
    Weights stored as (in, out), i.e. transposed relative to PyTorch's (out, in)."""
    ks = jax.random.split(key, 6)

    def lin(kw, kb, fan_in, fan_out):
        bound = 1.0 / math.sqrt(fan_in)
        w = jax.random.uniform(kw, (fan_in, fan_out), jnp.float32, -bound, bound)
        b = jax.random.uniform(kb, (1, fan_out), jnp.float32, -bound, bound)
        return w, b

    w1, b1 = lin(ks[0], ks[1], D_IN, D_H1)            # fc11: 57 -> 64
    w2, b2 = lin(ks[2], ks[3], D_H1, D_H2)            # fc22: 64 -> 32
    w3, b3 = lin(ks[4], ks[5], D_H2, NUM_CLASSES)     # fc33: 32 -> 10
    return (w1, b1, w2, b2, w3, b3)


def reference_forward(x, params):
    """Pure-JAX fp32 reference identical to the PyTorch forward (mlp path)."""
    w1, b1, w2, b2, w3, b3 = params
    h = _leaky_relu(jnp.dot(x, w1) + b1)
    h = _leaky_relu(jnp.dot(h, w2) + b2)
    return jnp.dot(h, w3) + b3


if __name__ == "__main__":
    key = jax.random.PRNGKey(0)
    k_params, k_x1, k_x2 = jax.random.split(key, 3)
    params = init_params(k_params)

    # Small primary case: single tile.
    B1 = 8
    x1 = jax.random.normal(k_x1, (B1, D_IN), jnp.float32)
    out1 = jax.block_until_ready(cnn_mlp_forward(x1, params))
    ref1 = reference_forward(x1, params)
    assert out1.shape == (B1, NUM_CLASSES)
    assert jnp.allclose(out1, ref1, atol=1e-4, rtol=1e-4), "mismatch vs reference (B=8)"

    # Secondary case exercising multi-tile grid + batch padding (B not multiple of tile_b).
    B2 = 300
    x2 = jax.random.normal(k_x2, (B2, D_IN), jnp.float32)
    out2 = jax.block_until_ready(cnn_mlp_forward(x2, params, tile_b=128))
    ref2 = reference_forward(x2, params)
    assert out2.shape == (B2, NUM_CLASSES)
    assert jnp.allclose(out2, ref2, atol=1e-4, rtol=1e-4), "mismatch vs reference (B=300)"

    print("KERNEL_OK")
</pallas_src>

<mosaic_0001>
module attributes {stable_mosaic.version = 11 : i64} {
  func.func @mlp_kernel(%arg0: i32, %arg1: memref<8x57xf32, #tpu.memory_space<vmem>>, %arg2: memref<57x64xf32, #tpu.memory_space<vmem>>, %arg3: memref<1x64xf32, #tpu.memory_space<vmem>>, %arg4: memref<64x32xf32, #tpu.memory_space<vmem>>, %arg5: memref<1x32xf32, #tpu.memory_space<vmem>>, %arg6: memref<32x10xf32, #tpu.memory_space<vmem>>, %arg7: memref<1x10xf32, #tpu.memory_space<vmem>>, %arg8: memref<8x10xf32, #tpu.memory_space<vmem>>) attributes {dimension_semantics = [#tpu.dimension_semantics<parallel>], iteration_bounds = array<i64: 1>, scalar_prefetch = 0 : i64, scratch_operands = 0 : i64, tpu.core_type = #tpu.core_type<tc>, window_params = [{transform_indices = @transform_0, window_bounds = array<i64: 8, 57>}, {pipeline_mode = #tpu.pipeline_mode<synchronous>, transform_indices = @transform_1, window_bounds = array<i64: 57, 64>}, {pipeline_mode = #tpu.pipeline_mode<synchronous>, transform_indices = @transform_2, window_bounds = array<i64: 1, 64>}, {pipeline_mode = #tpu.pipeline_mode<synchronous>, transform_indices = @transform_3, window_bounds = array<i64: 64, 32>}, {pipeline_mode = #tpu.pipeline_mode<synchronous>, transform_indices = @transform_4, window_bounds = array<i64: 1, 32>}, {pipeline_mode = #tpu.pipeline_mode<synchronous>, transform_indices = @transform_5, window_bounds = array<i64: 32, 10>}, {pipeline_mode = #tpu.pipeline_mode<synchronous>, transform_indices = @transform_6, window_bounds = array<i64: 1, 10>}, {transform_indices = @transform_7, window_bounds = array<i64: 8, 10>}]} {
    %c0 = arith.constant 0 : index
    %c0_0 = arith.constant 0 : index
    %0 = vector.load %arg1[%c0, %c0_0] : memref<8x57xf32, #tpu.memory_space<vmem>>, vector<8x57xf32>
    %c0_1 = arith.constant 0 : index
    %c0_2 = arith.constant 0 : index
    %1 = vector.load %arg2[%c0_1, %c0_2] : memref<57x64xf32, #tpu.memory_space<vmem>>, vector<57x64xf32>
    %cst = arith.constant dense<0.000000e+00> : vector<8x64xf32>
    %2 = tpu.matmul %0, %1, %cst {dimension_numbers = #tpu.dot_dimension_numbers<[1], [0], [0], [1], [0, 0, 1, 1], [], []>} : vector<8x57xf32>, vector<57x64xf32>, vector<8x64xf32> -> vector<8x64xf32>
    %c0_3 = arith.constant 0 : index
    %c0_4 = arith.constant 0 : index
    %3 = vector.load %arg3[%c0_3, %c0_4] : memref<1x64xf32, #tpu.memory_space<vmem>>, vector<1x64xf32>
    %4 = vector.broadcast %3 : vector<1x64xf32> to vector<8x64xf32>
    %5 = arith.addf %2, %4 : vector<8x64xf32>
    %cst_5 = arith.constant 0.000000e+00 : f32
    %6 = vector.broadcast %cst_5 : f32 to vector<8x64xf32>
    %7 = arith.cmpf ogt, %5, %6 : vector<8x64xf32>
    %cst_6 = arith.constant 2.000000e-01 : f32
    %8 = vector.broadcast %cst_6 : f32 to vector<8x64xf32>
    %9 = arith.mulf %8, %5 : vector<8x64xf32>
    %10 = arith.select %7, %5, %9 : vector<8x64xi1>, vector<8x64xf32>
    %c0_7 = arith.constant 0 : index
    %c0_8 = arith.constant 0 : index
    %11 = vector.load %arg4[%c0_7, %c0_8] : memref<64x32xf32, #tpu.memory_space<vmem>>, vector<64x32xf32>
    %cst_9 = arith.constant dense<0.000000e+00> : vector<8x32xf32>
    %12 = tpu.matmul %10, %11, %cst_9 {dimension_numbers = #tpu.dot_dimension_numbers<[1], [0], [0], [1], [0, 0, 1, 1], [], []>} : vector<8x64xf32>, vector<64x32xf32>, vector<8x32xf32> -> vector<8x32xf32>
    %c0_10 = arith.constant 0 : index
    %c0_11 = arith.constant 0 : index
    %13 = vector.load %arg5[%c0_10, %c0_11] : memref<1x32xf32, #tpu.memory_space<vmem>>, vector<1x32xf32>
    %14 = vector.broadcast %13 : vector<1x32xf32> to vector<8x32xf32>
    %15 = arith.addf %12, %14 : vector<8x32xf32>
    %cst_12 = arith.constant 0.000000e+00 : f32
    %16 = vector.broadcast %cst_12 : f32 to vector<8x32xf32>
    %17 = arith.cmpf ogt, %15, %16 : vector<8x32xf32>
    %cst_13 = arith.constant 2.000000e-01 : f32
    %18 = vector.broadcast %cst_13 : f32 to vector<8x32xf32>
    %19 = arith.mulf %18, %15 : vector<8x32xf32>
    %20 = arith.select %17, %15, %19 : vector<8x32xi1>, vector<8x32xf32>
    %c0_14 = arith.constant 0 : index
    %c0_15 = arith.constant 0 : index
    %21 = vector.load %arg6[%c0_14, %c0_15] : memref<32x10xf32, #tpu.memory_space<vmem>>, vector<32x10xf32>
    %cst_16 = arith.constant dense<0.000000e+00> : vector<8x10xf32>
    %22 = tpu.matmul %20, %21, %cst_16 {dimension_numbers = #tpu.dot_dimension_numbers<[1], [0], [0], [1], [0, 0, 1, 1], [], []>} : vector<8x32xf32>, vector<32x10xf32>, vector<8x10xf32> -> vector<8x10xf32>
    %c0_17 = arith.constant 0 : index
    %c0_18 = arith.constant 0 : index
    %23 = vector.load %arg7[%c0_17, %c0_18] : memref<1x10xf32, #tpu.memory_space<vmem>>, vector<1x10xf32>
    %24 = vector.broadcast %23 : vector<1x10xf32> to vector<8x10xf32>
    %25 = arith.addf %22, %24 : vector<8x10xf32>
    %c0_19 = arith.constant 0 : index
    %c0_20 = arith.constant 0 : index
    %26 = vector.load %arg8[%c0_19, %c0_20] : memref<8x10xf32, #tpu.memory_space<vmem>>, vector<8x10xf32>
    tpu.vector_store %arg8[%c0_19, %c0_20], %25 {strides = array<i32>} : memref<8x10xf32, #tpu.memory_space<vmem>>, vector<8x10xf32>,
    return
  }
  func.func @transform_0(%arg0: i32) -> (i32, i32) {
    %c0_i32 = arith.constant 0 : i32
    %c0_i32_0 = arith.constant 0 : i32
    return %arg0, %c0_i32 : i32, i32
  }
  func.func @transform_1(%arg0: i32) -> (i32, i32) {
    %c0_i32 = arith.constant 0 : i32
    %c0_i32_0 = arith.constant 0 : i32
    %c0_i32_1 = arith.constant 0 : i32
    return %c0_i32, %c0_i32_0 : i32, i32
  }
  func.func @transform_2(%arg0: i32) -> (i32, i32) {
    %c0_i32 = arith.constant 0 : i32
    %c0_i32_0 = arith.constant 0 : i32
    %c0_i32_1 = arith.constant 0 : i32
    return %c0_i32, %c0_i32_0 : i32, i32
  }
  func.func @transform_3(%arg0: i32) -> (i32, i32) {
    %c0_i32 = arith.constant 0 : i32
    %c0_i32_0 = arith.constant 0 : i32
    %c0_i32_1 = arith.constant 0 : i32
    return %c0_i32, %c0_i32_0 : i32, i32
  }
  func.func @transform_4(%arg0: i32) -> (i32, i32) {
    %c0_i32 = arith.constant 0 : i32
    %c0_i32_0 = arith.constant 0 : i32
    %c0_i32_1 = arith.constant 0 : i32
    return %c0_i32, %c0_i32_0 : i32, i32
  }
  func.func @transform_5(%arg0: i32) -> (i32, i32) {
    %c0_i32 = arith.constant 0 : i32
    %c0_i32_0 = arith.constant 0 : i32
    %c0_i32_1 = arith.constant 0 : i32
    return %c0_i32, %c0_i32_0 : i32, i32
  }
  func.func @transform_6(%arg0: i32) -> (i32, i32) {
    %c0_i32 = arith.constant 0 : i32
    %c0_i32_0 = arith.constant 0 : i32
    %c0_i32_1 = arith.constant 0 : i32
    return %c0_i32, %c0_i32_0 : i32, i32
  }
  func.func @transform_7(%arg0: i32) -> (i32, i32) {
    %c0_i32 = arith.constant 0 : i32
    %c0_i32_0 = arith.constant 0 : i32
    return %arg0, %c0_i32 : i32, i32
  }
}

</mosaic_0001>

<bundles_post_ra>
// kernel: tpu_custom_call.1
= control target key start
LH: loop header
LB: loop body
LE: loop exit
PB: predicated region body
PF: predicated region fallthrough
CT: control target
= control target key end

     0   :  { %v456_v3 = vmov 0.0|0.0   ;;  %vm457_vm0 = vmmov 0   ;;  %v458_v6 = vmov 0.0   ;;  %s588_s0 = inlined_call_operand.vmem [shape: f32[8,57], index: 0, kind: input, shape index: {}]   ;;  %s589_s1 = inlined_call_operand.vmem [shape: f32[57,64], index: 1, kind: input, shape index: {}]   ;;  %s590_s2 = inlined_call_operand.vmem [shape: f32[1,64], index: 2, kind: input, shape index: {}]   ;;  %s591_s3 = inlined_call_operand.vmem [shape: f32[64,32], index: 3, kind: input, shape index: {}]   ;;  %s592_s4 = inlined_call_operand.vmem [shape: f32[1,32], index: 4, kind: input, shape index: {}]   ;;  %s593_s5 = inlined_call_operand.vmem [shape: f32[32,10], index: 5, kind: input, shape index: {}]   ;;  %s594_s6 = inlined_call_operand.vmem [shape: f32[1,10], index: 6, kind: input, shape index: {}]   ;;  %s595_s7 = inlined_call_operand.hbm [shape: f32[8,10], index: 7, kind: output, shape index: {}]  }
   0x1   :  { %v28_v0 = vld [vmem:[%s589_s1] sm:$0xff]  ;;  %v29_v1 = vld [vmem:[%s589_s1 + $0x8] sm:$0xff]  ;;  %v30_v2 = vld [vmem:[%s589_s1 + $0x10] sm:$0xff]  ;;  %396 = vmatprep.subr.bf16.mxu0 %v456_v3  ;;  %409 = vmatprep.subr.bf16.mxu1 %v456_v3 }
   0x2   :  { %v397_v4 = vpack.c.bf16 %v29_v1, %v28_v0  ;;  %v31_v5 = vld [vmem:[%s589_s1 + $0x18] sm:$0xff]  ;;  %363 = vmatprep.mubr.msk.f32.mxu0 %vm457_vm0, %v458_v6  ;;  %382 = vmatprep.mubr.msk.f32.mxu1 %vm457_vm0, %v458_v6  ;;  %v32_v8 = vld [vmem:[%s589_s1 + $0x20] sm:$0xff]  ;;  %v125_v10 = vld [vmem:[%s591_s3 + $0x8] sm:$0xff] }
   0x3   :  { %v400_v7 = vpack.c.bf16 %v31_v5, %v30_v2  ;;  %v124_v9 = vld [vmem:[%s591_s3] sm:$0xff]  ;;  %v33_v11 = vld [vmem:[%s589_s1 + $0x28] sm:$0xff]  ;;  %v126_v13 = vld [vmem:[%s591_s3 + $0x10] sm:$0xff] }
   0x4   :  { %398 = vmatpush3.bf16.msra.mxu0 %v397_v4  ;;  %v410_v12 = vpack.c.bf16 %v125_v10, %v124_v9  ;;  %v127_v14 = vld [vmem:[%s591_s3 + $0x18] sm:$0xff] }
   0x5   :  { %399 = vmatprep.subr.bf16.mxu0 %v456_v3 }
   0x6   :  { %12 = vsyncpa [#allocation3], 0  ;;  %411 = vmatpush3.bf16.msra.mxu1 %v410_v12  ;;  %v413_v15 = vpack.c.bf16 %v127_v14, %v126_v13  ;;  %v403_v16 = vpack.c.bf16 %v33_v11, %v32_v8  ;;  %v128_v17 = vld [vmem:[%s591_s3 + $0x20] sm:$0xff]  ;;  %v129_v18 = vld [vmem:[%s591_s3 + $0x28] sm:$0xff]  ;;  %vm47_vm1 = vcmask 1040384   ;;  %vm459_vm2 = vmmov 1  }
   0x7   :  { %412 = vmatprep.subr.bf16.mxu1 %v456_v3  ;;  %v34_v19 = vld [vmem:[%s589_s1 + $0x30] sm:$0xff]  ;;  %v35_v20 = vld [vmem:[%s589_s1 + $0x38] sm:$0x1]  ;;  %v416_v21 = vpack.c.bf16 %v129_v18, %v128_v17  ;;  %vm407_vm3 = vmpackc.low %vm47_vm1, %vm459_vm2  ;;  %vm43_vm4 = vcmask 465920   ;;  %vm139_vm6 = vcmask 523264   ;;  %vm227_vm8 = vcmask 261120  }
   0x8   :  { %401 = vmatpush3.bf16.msra.mxu0 %v400_v7  ;;  %v406_v22 = vpack.c.bf16 %v35_v20, %v34_v19  ;;  %v27_v23 = vld [vmem:[%s588_s0] sm:$0xff]  ;;  %v130_v24 = vld [vmem:[%s591_s3 + $0x30] sm:$0xff]  ;;  %v131_v25 = vld [vmem:[%s591_s3 + $0x38] sm:$0xff]  ;;  %s460_s22 = smov [#allocation2]   ;;  %vm301_vm9 = vcmask 80896  }
   0x9   :  { %402 = vmatprep.subr.bf16.mxu0 %v456_v3  ;;  %v419_v26 = vpack.c.bf16 %v131_v25, %v130_v24  ;;  %v216_v27 = vld [vmem:[%s593_s5] sm:$0xff]  ;;  %v217_v28 = vld [vmem:[%s593_s5 + $0x8] sm:$0xff]  ;;  %v218_v36 = vld [vmem:[%s593_s5 + $0x10] sm:$0xff] }
   0xa   :  { %414 = vmatpush3.bf16.msra.mxu1 %v413_v15  ;;  %v422_v29 = vpack.c.bf16 %v217_v28, %v216_v27  ;;  %v317_v30 = vld [vmem:[%s590_s2] ss:$0 sm:$0xff]  ;;  %v219_v37 = vld [vmem:[%s593_s5 + $0x18] sm:$0xff]  ;;  %s309_s5 = sshll.u32 %s460_s22, 4  ;;  %s310_s5 = int_to_ptr.vmem [resolvable:$true] %s309_s5 }
   0xb   :  { %415 = vmatprep.subr.bf16.mxu1 %v456_v3  ;;  %v425_v38 = vpack.c.bf16 %v219_v37, %v218_v36  ;;  %v320_v39 = vld [vmem:[%s592_s4] ss:$0 sm:$0xff]  ;;  %s432_s4 = scalar_lea.vmem %s310_s5, 128  ;;  %p437_p1 = scmp.lt.s32.totalorder %s310_s5, %s310_s5 }
   0xc   :  { %404 = vmatpush3.bf16.msra.mxu0 %v403_v16  ;;  %v322_v45 = vld [vmem:[%s594_s6] ss:$0 sm:$0xff]  ;;  %p433_p0 = scmp.ne.s32.totalorder %s310_s5, %s432_s4  ;;  %p438_p2 = scmp.lt.s32.totalorder %s432_s4, %s432_s4 }
   0xd   :  { %405 = vmatprep.subr.bf16.mxu0 %v456_v3 }
   0xe   :  { %417 = vmatpush3.bf16.msra.mxu1 %v416_v21  ;;  %p439_p3 = por %p438_p2, %p437_p1 }
   0xf   :  { %418 = vmatprep.subr.bf16.mxu1 %v456_v3 }
  0x10   :  { %408 = vmatpush3.bf16.msk.msra.mxu0 %vm407_vm3, %v406_v22  ;;  %p440_p4 = pnand %p439_p3, %p433_p0 }
  0x11   :  { %421 = vmatprep.subr.bf16.mxu0 %v456_v3 }
  0x12   :  { %420 = vmatpush3.bf16.msra.mxu1 %v419_v26 }
  0x13   :  { %364 = vmatmul.mubr.msk.f32.vlgmr.msra.gmra.mrb[0].mxu0 %vm43_vm4, %v27_v23 }
  0x14   :  { %393 = vmatprep.mubr.msk.f32.mxu0 %vm457_vm0, %v458_v6  ;;  %423 = vmatpush3.bf16.msra.mxu0 %v422_v29 }
  0x15   :  { %424 = vmatprep.subr.bf16.mxu0 %v456_v3 }
  0x18   :  { %426 = vmatpush3.bf16.msra.mxu0 %v425_v38 }
  0xe6   :  { %v117_v31 = vpop.f32.mrb[0].mxu0 }
  0xe7   :  { %v118_v32 = vadd.f32 %v317_v30, %v117_v31  ;;  %v365_v33 = vpop.f32.mrb[1].mxu0 }
  0xe9   :  { %vm121_vm5 = vcmp.gt.f32.partialorder %v118_v32, 0.0  ;;  %v122_v34 = vmul.f32 0.2, %v118_v32 }
  0xeb   :  { %v123_v35 = vsel %vm121_vm5, %v118_v32, %v122_v34 }
  0xec   :  { %383 = vmatmul.mubr.msk.f32.vlgmr.msra.gmra.mrb[0].mxu1 %vm139_vm6, %v123_v35 }
 0x1bf   :  { %v209_v40 = vpop.f32.mrb[0].mxu1 }
 0x1c0   :  { %v210_v41 = vadd.f32 %v320_v39, %v209_v40  ;;  %v384_v42 = vpop.f32.mrb[1].mxu1 }
 0x1c2   :  { %vm213_vm7 = vcmp.gt.f32.partialorder %v210_v41, 0.0  ;;  %v214_v43 = vmul.f32 0.2, %v210_v41 }
 0x1c4   :  { %v215_v44 = vsel %vm213_vm7, %v210_v41, %v214_v43 }
 0x1c5   :  { %394 = vmatmul.mubr.msk.f32.vlgmr.msra.gmra.mrb[2].mxu0 %vm227_vm8, %v215_v44 }
 0x298   :  { %v297_v46 = vpop.f32.mrb[2].mxu0 }
 0x299   :  { %v298_v47 = vadd.f32 %v322_v45, %v297_v46  ;;  %v395_v48 = vpop.f32.mrb[3].mxu0 }
 0x29b   :  { %302 = vst.msk [vmem:[#allocation2] sm:$0xff] %vm301_vm9, %v298_v47 }
 0x29c   :  { %443 = shalt.err (!%p440_p4)
}
 0x29d   :  { %s444_s25 = scalar_lea.hbm %s595_s7, 128 }
 0x29e   :  { %p445_p5 = scmp.ne.s32.totalorder %s595_s7, %s444_s25  ;;  %p448_p6 = scmp.lt.u32.totalorder %s444_s25, %s595_s7 }
 0x2a0   :  { %p450_p7 = pnand %p448_p6, %p445_p5 }
 0x2a2   :  { %453 = shalt.err (!%p450_p7)
}
 0x2a3   :  { %312 = dma.vmem_to_hbm [thread:$0]  %s310_s5, 128, %s595_s7, [#allocation3]  }
 0x2a4   :  { %454 = dma.done.wait [#allocation3], 128  }
 0x2a5   :  { %455 = vsyncadd [#allocation3], 4294967168 }
 0x2a6   :  { %316 = vsyncpa [#allocation3], 1 }

</bundles_post_ra>
